<compile_context>
chip_gen: v6e
topology: v6e:2x2x1
jax: 0.10.0
libtpu: 0.0.40
codegen_flags: <defaults>
</compile_context>

<pallas_src>
import functools

import jax
import jax.numpy as jnp
from jax.experimental import pallas as pl
from jax.experimental.pallas import tpu as pltpu


def _parse_padding(padding_size):
    if isinstance(padding_size, int):
        return padding_size, padding_size, padding_size, padding_size  # l, t, r, b
    if isinstance(padding_size, tuple) and len(padding_size) == 2:
        return padding_size[0], padding_size[1], padding_size[0], padding_size[1]
    if isinstance(padding_size, tuple) and len(padding_size) == 4:
        return padding_size
    raise ValueError("The padding size should be: int, tuple of size 2 or tuple of size 4")


def _spheric_pad_kernel(x_ref, o_ref, *, pad_left, pad_top, pad_right, pad_bottom, H, W):
    """x_ref: (TILE_P, H, W); o_ref: (TILE_P, Ho, Wo).

    Every output element is written exactly once via static-region stores;
    wrapped halo/corner data is read directly from the matching input region.
    All slice bounds are Python ints -> fully static for Mosaic.
    """
    top, bot = pad_top, pad_bottom
    lft, rgt = pad_left, pad_right

    # Interior (the single full-plane store, straight from the input block).
    o_ref[:, top:top + H, lft:lft + W] = x_ref[:, :, :]

    # Row-wrap halo strips (top takes the bottom rows of x, and vice versa).
    if top > 0:
        o_ref[:, 0:top, lft:lft + W] = x_ref[:, H - top:H, :]
    if bot > 0:
        o_ref[:, top + H:top + H + bot, lft:lft + W] = x_ref[:, 0:bot, :]

    # Column-wrap halo strips.
    if lft > 0:
        o_ref[:, top:top + H, 0:lft] = x_ref[:, :, W - lft:W]
    if rgt > 0:
        o_ref[:, top:top + H, lft + W:lft + W + rgt] = x_ref[:, :, 0:rgt]

    # Corners (wrap in both directions; matches the PyTorch concat order).
    if top > 0 and lft > 0:
        o_ref[:, 0:top, 0:lft] = x_ref[:, H - top:H, W - lft:W]
    if top > 0 and rgt > 0:
        o_ref[:, 0:top, lft + W:lft + W + rgt] = x_ref[:, H - top:H, 0:rgt]
    if bot > 0 and lft > 0:
        o_ref[:, top + H:top + H + bot, 0:lft] = x_ref[:, 0:bot, W - lft:W]
    if bot > 0 and rgt > 0:
        o_ref[:, top + H:top + H + bot, lft + W:lft + W + rgt] = x_ref[:, 0:bot, 0:rgt]


def _round_up(x, m):
    return ((x + m - 1) // m) * m


def _padded_plane_bytes(h, w, dtype):
    """Bytes one (h, w) plane occupies in VMEM once laid out in (sublane, 128) tiles."""
    itemsize = jnp.dtype(dtype).itemsize
    sublane = 8 * max(1, 4 // itemsize)  # 8 for f32, 16 for bf16/f16, 32 for int8/fp8
    return _round_up(h, sublane) * _round_up(w, 128) * itemsize


def _vmem_caps():
    """(physical VMEM bytes, padded (in+out) block-pair budget) for this generation."""
    try:
        cap = int(pltpu.get_tpu_info().vmem_capacity_bytes)
    except Exception:
        cap = 64 << 20  # conservative fallback (v7x per-TC VMEM)
    # ~16 MiB padded pair on 128 MiB parts (v5e/v6e), ~8 MiB on v7x (64 MiB/TC);
    # double-buffering doubles this, leaving ample headroom on every generation.
    pair_budget = min(16 << 20, cap // 8)
    return cap, pair_budget


def _choose_tile_p(num_planes, padded_pair_bytes, pair_budget):
    """Largest plane-tile whose padded (in+out) block pair fits the budget,
    capped so the grid has >= 2 steps (megacore sharding on v7x)."""
    max_tile = max(1, pair_budget // max(1, padded_pair_bytes))
    tile = min(num_planes, max_tile)
    if num_planes >= 2:
        tile = min(tile, pl.cdiv(num_planes, 2))
    return max(1, int(tile))


def spheric_pad(x, padding_size):
    pad_left, pad_top, pad_right, pad_bottom = _parse_padding(padding_size)
    N, C, H, W = x.shape
    # Circular wrap is only well defined when each pad side fits in the image.
    assert 0 <= pad_top <= H and 0 <= pad_bottom <= H, "vertical padding must be in [0, H]"
    assert 0 <= pad_left <= W and 0 <= pad_right <= W, "horizontal padding must be in [0, W]"

    Ho = H + pad_top + pad_bottom
    Wo = W + pad_left + pad_right
    P = N * C

    # --- block sizing against *padded* VMEM bytes, per-generation budget ---
    padded_pair = _padded_plane_bytes(H, W, x.dtype) + _padded_plane_bytes(Ho, Wo, x.dtype)
    vmem_cap, pair_budget = _vmem_caps()
    tile_p = _choose_tile_p(P, padded_pair, pair_budget)
    grid = (pl.cdiv(P, tile_p),)

    # Explicit scoped-VMEM limit: double-buffered (in + out) blocks + headroom,
    # floored at 32 MiB and capped at ~3/4 of physical VMEM for this chip.
    needed = 2 * tile_p * padded_pair
    vmem_limit = int(min(vmem_cap * 3 // 4, max(needed * 5 // 4 + (1 << 20), 32 << 20)))

    x_flat = x.reshape(P, H, W)  # contiguous view, free

    kernel = functools.partial(
        _spheric_pad_kernel,
        pad_left=pad_left,
        pad_top=pad_top,
        pad_right=pad_right,
        pad_bottom=pad_bottom,
        H=H,
        W=W,
    )

    dtype_bytes = jnp.dtype(x.dtype).itemsize
    bytes_accessed = (P * H * W + P * Ho * Wo) * dtype_bytes

    out_flat = pl.pallas_call(
        kernel,
        out_shape=jax.ShapeDtypeStruct((P, Ho, Wo), x.dtype),
        grid=grid,
        in_specs=[pl.BlockSpec((tile_p, H, W), lambda p: (p, 0, 0))],
        out_specs=pl.BlockSpec((tile_p, Ho, Wo), lambda p: (p, 0, 0)),
        compiler_params=pltpu.CompilerParams(
            dimension_semantics=("parallel",),
            vmem_limit_bytes=vmem_limit,
        ),
        cost_estimate=pl.CostEstimate(
            flops=0, transcendentals=0, bytes_accessed=bytes_accessed
        ),
    )(x_flat)
    return out_flat.reshape(N, C, Ho, Wo)


def spheric_pad_ref(x, padding_size):
    """Pure-JAX replica of the exact PyTorch concat sequence (valid for pads >= 1)."""
    pad_left, pad_top, pad_right, pad_bottom = _parse_padding(padding_size)
    out = jnp.concatenate([x, x[:, :, :pad_bottom, :]], axis=2)
    out = jnp.concatenate([out, out[:, :, :, :pad_right]], axis=3)
    out = jnp.concatenate(
        [out[:, :, -(pad_bottom + pad_top):-pad_bottom, :], out], axis=2
    )
    out = jnp.concatenate(
        [out[:, :, :, -(pad_right + pad_left):-pad_right], out], axis=3
    )
    return out


if __name__ == "__main__":
    key = jax.random.PRNGKey(0)
    x = jax.random.normal(key, (2, 4, 16, 16), dtype=jnp.float32)

    # Symmetric padding (int form).
    out = jax.block_until_ready(spheric_pad(x, 2))
    ref = spheric_pad_ref(x, 2)
    assert out.shape == ref.shape, (out.shape, ref.shape)
    assert jnp.array_equal(out, ref), "Pallas output mismatch vs reference (pad=2)"

    # Asymmetric padding (l, t, r, b) to exercise all halo/corner branches.
    pad4 = (3, 1, 2, 4)
    out2 = jax.block_until_ready(spheric_pad(x, pad4))
    ref2 = spheric_pad_ref(x, pad4)
    assert out2.shape == ref2.shape, (out2.shape, ref2.shape)
    assert jnp.array_equal(out2, ref2), "Pallas output mismatch vs reference (pad=(3,1,2,4))"

    # bf16 input: exercises the 16-sublane padded-bytes accounting; still an
    # exact copy so bitwise equality holds.
    xb = x.astype(jnp.bfloat16)
    out3 = jax.block_until_ready(spheric_pad(xb, 1))
    ref3 = spheric_pad_ref(xb, 1)
    assert jnp.array_equal(out3, ref3), "Pallas output mismatch vs reference (bf16, pad=1)"

    # P = N*C = 3: cdiv tiling produces a ragged last block (clipped writeback).
    x4 = jax.random.normal(jax.random.PRNGKey(1), (3, 1, 16, 16), dtype=jnp.float32)
    out4 = jax.block_until_ready(spheric_pad(x4, (2, 1, 2, 1)))
    ref4 = spheric_pad_ref(x4, (2, 1, 2, 1))
    assert jnp.array_equal(out4, ref4), "Pallas output mismatch vs reference (ragged P=3)"

    print("KERNEL_OK")
</pallas_src>

<mosaic_0001>
module attributes {stable_mosaic.version = 11 : i64} {
  func.func @_spheric_pad_kernel(%arg0: i32, %arg1: memref<4x16x16xf32, #tpu.memory_space<vmem>>, %arg2: memref<4x20x20xf32, #tpu.memory_space<vmem>>) attributes {dimension_semantics = [#tpu.dimension_semantics<parallel>], iteration_bounds = array<i64: 2>, scalar_prefetch = 0 : i64, scratch_operands = 0 : i64, tpu.core_type = #tpu.core_type<tc>, window_params = [{transform_indices = @transform_0, window_bounds = array<i64: 4, 16, 16>}, {transform_indices = @transform_1, window_bounds = array<i64: 4, 20, 20>}]} {
    %c0 = arith.constant 0 : index
    %c0_0 = arith.constant 0 : index
    %c0_1 = arith.constant 0 : index
    %0 = vector.load %arg1[%c0, %c0_0, %c0_1] : memref<4x16x16xf32, #tpu.memory_space<vmem>>, vector<4x16x16xf32>
    %c0_2 = arith.constant 0 : index
    %c2 = arith.constant 2 : index
    %c2_3 = arith.constant 2 : index
    %1 = vector.load %arg2[%c0_2, %c2, %c2_3] : memref<4x20x20xf32, #tpu.memory_space<vmem>>, vector<4x16x16xf32>
    tpu.vector_store %arg2[%c0_2, %c2, %c2_3], %0 {strides = array<i32>} : memref<4x20x20xf32, #tpu.memory_space<vmem>>, vector<4x16x16xf32>,
    %c0_4 = arith.constant 0 : index
    %c14 = arith.constant 14 : index
    %c0_5 = arith.constant 0 : index
    %2 = vector.load %arg1[%c0_4, %c14, %c0_5] : memref<4x16x16xf32, #tpu.memory_space<vmem>>, vector<4x2x16xf32>
    %c0_6 = arith.constant 0 : index
    %c0_7 = arith.constant 0 : index
    %c2_8 = arith.constant 2 : index
    %3 = vector.load %arg2[%c0_6, %c0_7, %c2_8] : memref<4x20x20xf32, #tpu.memory_space<vmem>>, vector<4x2x16xf32>
    tpu.vector_store %arg2[%c0_6, %c0_7, %c2_8], %2 {strides = array<i32>} : memref<4x20x20xf32, #tpu.memory_space<vmem>>, vector<4x2x16xf32>,
    %c0_9 = arith.constant 0 : index
    %c0_10 = arith.constant 0 : index
    %c0_11 = arith.constant 0 : index
    %4 = vector.load %arg1[%c0_9, %c0_10, %c0_11] : memref<4x16x16xf32, #tpu.memory_space<vmem>>, vector<4x2x16xf32>
    %c0_12 = arith.constant 0 : index
    %c18 = arith.constant 18 : index
    %c2_13 = arith.constant 2 : index
    %5 = vector.load %arg2[%c0_12, %c18, %c2_13] : memref<4x20x20xf32, #tpu.memory_space<vmem>>, vector<4x2x16xf32>
    tpu.vector_store %arg2[%c0_12, %c18, %c2_13], %4 {strides = array<i32>} : memref<4x20x20xf32, #tpu.memory_space<vmem>>, vector<4x2x16xf32>,
    %c0_14 = arith.constant 0 : index
    %c0_15 = arith.constant 0 : index
    %c14_16 = arith.constant 14 : index
    %6 = vector.load %arg1[%c0_14, %c0_15, %c14_16] : memref<4x16x16xf32, #tpu.memory_space<vmem>>, vector<4x16x2xf32>
    %c0_17 = arith.constant 0 : index
    %c2_18 = arith.constant 2 : index
    %c0_19 = arith.constant 0 : index
    %7 = vector.load %arg2[%c0_17, %c2_18, %c0_19] : memref<4x20x20xf32, #tpu.memory_space<vmem>>, vector<4x16x2xf32>
    tpu.vector_store %arg2[%c0_17, %c2_18, %c0_19], %6 {strides = array<i32>} : memref<4x20x20xf32, #tpu.memory_space<vmem>>, vector<4x16x2xf32>,
    %c0_20 = arith.constant 0 : index
    %c0_21 = arith.constant 0 : index
    %c0_22 = arith.constant 0 : index
    %8 = vector.load %arg1[%c0_20, %c0_21, %c0_22] : memref<4x16x16xf32, #tpu.memory_space<vmem>>, vector<4x16x2xf32>
    %c0_23 = arith.constant 0 : index
    %c2_24 = arith.constant 2 : index
    %c18_25 = arith.constant 18 : index
    %9 = vector.load %arg2[%c0_23, %c2_24, %c18_25] : memref<4x20x20xf32, #tpu.memory_space<vmem>>, vector<4x16x2xf32>
    tpu.vector_store %arg2[%c0_23, %c2_24, %c18_25], %8 {strides = array<i32>} : memref<4x20x20xf32, #tpu.memory_space<vmem>>, vector<4x16x2xf32>,
    %c0_26 = arith.constant 0 : index
    %c14_27 = arith.constant 14 : index
    %c14_28 = arith.constant 14 : index
    %10 = vector.load %arg1[%c0_26, %c14_27, %c14_28] : memref<4x16x16xf32, #tpu.memory_space<vmem>>, vector<4x2x2xf32>
    %c0_29 = arith.constant 0 : index
    %c0_30 = arith.constant 0 : index
    %c0_31 = arith.constant 0 : index
    %11 = vector.load %arg2[%c0_29, %c0_30, %c0_31] : memref<4x20x20xf32, #tpu.memory_space<vmem>>, vector<4x2x2xf32>
    tpu.vector_store %arg2[%c0_29, %c0_30, %c0_31], %10 {strides = array<i32>} : memref<4x20x20xf32, #tpu.memory_space<vmem>>, vector<4x2x2xf32>,
    %c0_32 = arith.constant 0 : index
    %c14_33 = arith.constant 14 : index
    %c0_34 = arith.constant 0 : index
    %12 = vector.load %arg1[%c0_32, %c14_33, %c0_34] : memref<4x16x16xf32, #tpu.memory_space<vmem>>, vector<4x2x2xf32>
    %c0_35 = arith.constant 0 : index
    %c0_36 = arith.constant 0 : index
    %c18_37 = arith.constant 18 : index
    %13 = vector.load %arg2[%c0_35, %c0_36, %c18_37] : memref<4x20x20xf32, #tpu.memory_space<vmem>>, vector<4x2x2xf32>
    tpu.vector_store %arg2[%c0_35, %c0_36, %c18_37], %12 {strides = array<i32>} : memref<4x20x20xf32, #tpu.memory_space<vmem>>, vector<4x2x2xf32>,
    %c0_38 = arith.constant 0 : index
    %c0_39 = arith.constant 0 : index
    %c14_40 = arith.constant 14 : index
    %14 = vector.load %arg1[%c0_38, %c0_39, %c14_40] : memref<4x16x16xf32, #tpu.memory_space<vmem>>, vector<4x2x2xf32>
    %c0_41 = arith.constant 0 : index
    %c18_42 = arith.constant 18 : index
    %c0_43 = arith.constant 0 : index
    %15 = vector.load %arg2[%c0_41, %c18_42, %c0_43] : memref<4x20x20xf32, #tpu.memory_space<vmem>>, vector<4x2x2xf32>
    tpu.vector_store %arg2[%c0_41, %c18_42, %c0_43], %14 {strides = array<i32>} : memref<4x20x20xf32, #tpu.memory_space<vmem>>, vector<4x2x2xf32>,
    %c0_44 = arith.constant 0 : index
    %c0_45 = arith.constant 0 : index
    %c0_46 = arith.constant 0 : index
    %16 = vector.load %arg1[%c0_44, %c0_45, %c0_46] : memref<4x16x16xf32, #tpu.memory_space<vmem>>, vector<4x2x2xf32>
    %c0_47 = arith.constant 0 : index
    %c18_48 = arith.constant 18 : index
    %c18_49 = arith.constant 18 : index
    %17 = vector.load %arg2[%c0_47, %c18_48, %c18_49] : memref<4x20x20xf32, #tpu.memory_space<vmem>>, vector<4x2x2xf32>
    tpu.vector_store %arg2[%c0_47, %c18_48, %c18_49], %16 {strides = array<i32>} : memref<4x20x20xf32, #tpu.memory_space<vmem>>, vector<4x2x2xf32>,
    return
  }
  func.func @transform_0(%arg0: i32) -> (i32, i32, i32) {
    %c0_i32 = arith.constant 0 : i32
    %c0_i32_0 = arith.constant 0 : i32
    %c0_i32_1 = arith.constant 0 : i32
    return %arg0, %c0_i32, %c0_i32_0 : i32, i32, i32
  }
  func.func @transform_1(%arg0: i32) -> (i32, i32, i32) {
    %c0_i32 = arith.constant 0 : i32
    %c0_i32_0 = arith.constant 0 : i32
    %c0_i32_1 = arith.constant 0 : i32
    return %arg0, %c0_i32, %c0_i32_0 : i32, i32, i32
  }
}

</mosaic_0001>

<bundles_post_ra>
// kernel: tpu_custom_call.1
= control target key start
LH: loop header
LB: loop body
LE: loop exit
PB: predicated region body
PF: predicated region fallthrough
CT: control target
= control target key end

     0   :  { %6 = vsyncpa [#allocation3], 0  ;;  %s893_s0 = inlined_call_operand.hbm [shape: f32[8,16,16], index: 0, kind: input, shape index: {}]   ;;  %s894_s1 = inlined_call_operand.vmem [shape: f32[8,20,20], index: 1, kind: output, shape index: {}]  }
   0x1   :  { %8 = vsyncpa [#allocation3 + $0x1], 0  ;;  %s646_s6 = smov 0   ;;  %s648_s7 = smov 0  }
   0x2   :  { %s650_s8 = smov 0   ;;  %s652_s9 = smov 0  }
   0x3 LB: > { %s505_s10 = sadd.s32 4294967295, %s628_s9   ;;  %s666_s11 = sadd.s32 1, %s628_s9   ;;  %s628_s9 = sphi %s652_s9, %s903_s9   ;;  %s624_s8 = sphi %s650_s8, %s902_s8   ;;  %s620_s7 = sphi %s648_s7, %s901_s7   ;;  %s616_s6 = sphi %s646_s6, %s900_s6  }
   0x4   : > { %s18_s12 = ssub.s32 %s628_s9, %s666_s11  ;;  %s21_s13 = sadd.s32 1, %s624_s8 }
   0x5   : > { %p19_p0 = scmp.eq.s32.totalorder %s18_s12, 0  ;;  %p28_p1 = scmp.ne.s32.totalorder %s624_s8, %s620_s7 }
   0x6   : > { %p29_p2 = scmp.eq.s32.totalorder %s628_s9, 0  ;;  %p34_p3 = scmp.ne.s32.totalorder %s620_s7, %s616_s6 }
   0x7   : > { %s676_s14 = scalar_select %p19_p0, %s624_s8, %s21_s13  }
   0x8   : > { %p30_p4 = por %p29_p2, %p28_p1  ;;  %p35_p5 = scmp.eq.s32.totalorder %s505_s10, 0 }
   0x9   : > { %p528_p6 = scmp.lt.s32.totalorder %s628_s9, 2  ;;  %s84_s16 = sand.u32 1, %s624_s8  }
   0xa   : > { %p681_p7 = por %p35_p5, %p34_p3  ;;  %s509_s17 = sshll.u32 %s84_s16, 6 }
   0xb   : > { %s520_s18 = sshll.u32 %s628_s9, 10  ;;  %s88_s22 = scalar_lea.vmem [#allocation2], %s509_s17 }
   0xc   : > { %s896_s15 = scalar_select %p681_p7, 1, 0 }
   0xd   : > { %s690_s21 = scalar_lea.hbm %s893_s0, %s520_s18  ;;  %s96_s23 = sshll.u32 %s88_s22, 4  ;;  %s692_s23 = int_to_ptr.vmem [resolvable:$true] %s96_s23 }
   0xe   : > { %p694_p8 = pnand %p528_p6, %p30_p4  ;;  %s699_s25 = scalar_lea.sflag [#allocation3], %s84_s16 }
   0xf   : > { %s566_s26 = scalar_lea.hbm %s690_s21, 1024  ;;  %s571_s29 = scalar_lea.hbm %s893_s0, 2048 }
  0x10   : > { %p567_p10 = scmp.ne.s32.totalorder %s690_s21, %s566_s26  ;;  %p568_p11 = pneg %p694_p8 }
  0x11   : > { %p572_p0 = scmp.lt.s32.totalorder %s690_s21, %s893_s0  ;;  %p573_p1 = scmp.lt.s32.totalorder %s571_s29, %s566_s26 }
  0x12   : > { %p569_p12 = pnand %p568_p11, %p567_p10 }
  0x13   : > { %p574_p2 = por %p573_p1, %p572_p0 }
  0x14   : > { %p570_p13 = pneg %p569_p12 }
  0x16   : > { %p575_p3 = pnand %p574_p2, %p570_p13 }
  0x18   : > { %578 = shalt.err (!%p575_p3)
}
  0x19   : > { %s579_s3 = scalar_lea.vmem %s692_s23, 1024  ;;  %s630_s4 = smov [#allocation2]  }
  0x1a   : > { %p580_p4 = scmp.ne.s32.totalorder %s692_s23, %s579_s3  ;;  %s584_s5 = sshll.u32 %s630_s4, 4  ;;  %s585_s5 = int_to_ptr.vmem [resolvable:$false] %s584_s5 }
  0x1b   : > { %s586_s6 = scalar_lea.vmem %s585_s5, 2048  ;;  %p587_p10 = scmp.lt.s32.totalorder %s692_s23, %s585_s5 }
  0x1c   : > { %p582_p5 = pnand %p580_p4, %p568_p11  ;;  %p588_p12 = scmp.lt.s32.totalorder %s586_s6, %s579_s3 }
  0x1e   : > { %p583_p6 = pneg %p582_p5  ;;  %p589_p9 = por %p588_p12, %p587_p10 }
  0x20   : > { %p590_p7 = pnand %p589_p9, %p583_p6 }
  0x22   : > { %593 = shalt.err (!%p590_p7)
}
  0x23   : > { %s631_s12 = smov 128   ;;  %s632_s13 = smov 8  }
  0x24   : > { %527 = dma.hbm_to_vmem [thread:$0]  (!%p694_p8), %s690_s21, 1024, %s692_s23, %s699_s25, %s631_s12, %s631_s12, %s632_s13  }
  0x25   : > { %p104_p11 = scmp.lt.s32.totalorder %s628_s9, 3  ;;  %p898_p13 = scmp.ge.s32.totalorder %s628_s9, 1 }
  0x27   : > { %p105_p0 = pnand %p898_p13, %p104_p11 }
  0x28   : > { %s110_s16 = sand.u32 (!%p105_p0), 1, %s620_s7   ;;  %p899_p7 = scmp.ne.s32.totalorder (!%p105_p0), %s896_s15, 0 }
  0x29   : > { %108 = sbr.rel (%p105_p0) target bundleno = 256 (0x100), region = 24  ;;  %s514_s17 = sshll.u32 (!%p105_p0), %s110_s16, 6 }
  0x2a   : > { %s111_s18 = scalar_lea.sflag (!%p105_p0), [#allocation3], %s110_s16  ;;  %s724_s19 = scalar_lea.vmem (!%p105_p0), [#allocation2], %s514_s17 }
  0x2e   : > { %611 = dma.done.wait (%p899_p7), %s111_s18, 1024  }
  0x2f   : > { %613 = vsyncadd (%p899_p7), %s111_s18, 4294966272  ;;  %v731_v0 = vld [vmem:[%s724_s19 + $0x10] sm:$0xff]  ;;  %v142_v1 = vld [vmem:[%s724_s19] sm:$0xff]  ;;  %s633_s20 = smov 2   ;;  %s634_s15 = smov 114   ;;  %vm182_vm0 = vcmask 146448  }
  0x30   : > { %162 = vrot.lane.b32.xlu1 %v731_v0, %s633_s20  ;;  %158 = vrot.lane.b32.xlu0 %v142_v1, %s633_s20  ;;  %v145_v2 = vld [vmem:[%s724_s19 + $0x18] sm:$0xff]  ;;  %v143_v3 = vld [vmem:[%s724_s19 + $0x8] sm:$0xff]  ;;  %s635_s21 = smov 18   ;;  %s515_s22 = sshll.u32 %s505_s10, 2  ;;  %vm211_vm1 = vcmask 140304   ;;  %vm280_vm2 = vcmask 15360  }
  0x31   : > { %v147_v4 = vld [vmem:[%s724_s19 + $0x28] sm:$0xff]  ;;  %v146_v5 = vld [vmem:[%s724_s19 + $0x20] sm:$0xff]  ;;  %v740_v6 = vld [vmem:[%s724_s19 + $0x38] sm:$0xff]  ;;  %p136_p8 = scmp.lt.s32.totalorder %s515_s22, 7  ;;  %vm358_vm3 = vcmask 9216   ;;  %vm329_vm4 = vcmask 162960  }
  0x32   : > { %v743_v7 = vld [vmem:[%s724_s19 + $0x30] sm:$0xff]  ;;  %v192_v8 = vld [vmem:[%s724_s19 + $0x1e] sm:$0x3]  ;;  %v191_v9 = vld [vmem:[%s724_s19 + $0xe] sm:$0x3]  ;;  %vm383_vm5 = vcmask 156816  }
  0x33   : > { %v194_v10 = vld [vmem:[%s724_s19 + $0x3e] sm:$0x3]  ;;  %v193_v11 = vld [vmem:[%s724_s19 + $0x2e] sm:$0x3]  ;;  %v217_v12 = vld [vmem:[%s724_s19 + $0x10] sm:$0x3] }
  0x34   : > { %164 = vrot.lane.b32.xlu1 %v145_v2, %s633_s20  ;;  %160 = vrot.lane.b32.xlu0 %v143_v3, %s633_s20  ;;  %v216_v13 = vld [vmem:[%s724_s19] sm:$0x3]  ;;  %v219_v14 = vld [vmem:[%s724_s19 + $0x30] sm:$0x3]  ;;  %s905_s22 = smov (!%p136_p8, %s515_s22), 7 }
  0x35   : > { %v218_v15 = vld [vmem:[%s724_s19 + $0x20] sm:$0x3]  ;;  %v338_v17 = vld [vmem:[%s724_s19 + $0xe] sm:$0x3]  ;;  %v389_v18 = vld [vmem:[%s724_s19 + $0x10] sm:$0x3] }
  0x36   : > { %v388_v16 = vld [vmem:[%s724_s19] sm:$0x3]  ;;  %v339_v19 = vld [vmem:[%s724_s19 + $0x1e] sm:$0x3]  ;;  %v340_v21 = vld [vmem:[%s724_s19 + $0x2e] sm:$0x3] }
  0x37   : > { %v390_v20 = vld [vmem:[%s724_s19 + $0x20] sm:$0x3]  ;;  %v391_v22 = vld [vmem:[%s724_s19 + $0x30] sm:$0x3]  ;;  %v341_v23 = vld [vmem:[%s724_s19 + $0x3e] sm:$0x3] }
  0x38   : > { %168 = vrot.lane.b32.xlu1 %v147_v4, %s633_s20  ;;  %166 = vrot.lane.b32.xlu0 %v146_v5, %s633_s20  ;;  %v412_v24 = vld [vmem:[%s724_s19] sm:$0x3]  ;;  %v363_v25 = vld [vmem:[%s724_s19 + $0xe] sm:$0x3]  ;;  %s521_s23 = smul.u32 24, %s905_s22 }
  0x39   : > { %v413_v26 = vld [vmem:[%s724_s19 + $0x10] sm:$0x3]  ;;  %v364_v27 = vld [vmem:[%s724_s19 + $0x1e] sm:$0x3]  ;;  %v414_v28 = vld [vmem:[%s724_s19 + $0x20] sm:$0x3] }
  0x3a   : > { %v365_v29 = vld [vmem:[%s724_s19 + $0x2e] sm:$0x3]  ;;  %v415_v30 = vld [vmem:[%s724_s19 + $0x30] sm:$0x3]  ;;  %v366_v31 = vld [vmem:[%s724_s19 + $0x3e] sm:$0x3]  ;;  %s782_s26 = scalar_lea.vmem %s894_s1, %s521_s23 }
  0x3c   : > { %172 = vrot.lane.b32.xlu1 %v740_v6, %s633_s20  ;;  %170 = vrot.lane.b32.xlu0 %v743_v7, %s633_s20 }
  0x40   : > { %201 = vrot.lane.b32.xlu1 %v192_v8, %s633_s20  ;;  %199 = vrot.lane.b32.xlu0 %v191_v9, %s633_s20 }
  0x44   : > { %205 = vrot.lane.b32.xlu1 %v194_v10, %s633_s20  ;;  %203 = vrot.lane.b32.xlu0 %v193_v11, %s633_s20 }
  0x48   : > { %226 = vrot.lane.b32.xlu1 %v217_v12, %s633_s20  ;;  %224 = vrot.lane.b32.xlu0 %v216_v13, %s633_s20 }
  0x4c   : > { %230 = vrot.lane.b32.xlu1 %v219_v14, %s633_s20  ;;  %228 = vrot.lane.b32.xlu0 %v218_v15, %s633_s20 }
  0x50   : > { %258 = vrot.lane.b32.xlu1 %v143_v3, %s634_s15  ;;  %256 = vrot.lane.b32.xlu0 %v142_v1, %s634_s15 }
  0x54   : > { %396 = vrot.lane.b32.xlu1 %v388_v16, %s634_s15  ;;  %346 = vrot.lane.b32.xlu0 %v338_v17, %s634_s15 }
  0x58   : > { %262 = vrot.lane.b32.xlu1 %v145_v2, %s634_s15  ;;  %260 = vrot.lane.b32.xlu0 %v731_v0, %s634_s15 }
  0x5c   : > { %398 = vrot.lane.b32.xlu1 %v389_v18, %s634_s15  ;;  %348 = vrot.lane.b32.xlu0 %v339_v19, %s634_s15 }
  0x60   : > { %266 = vrot.lane.b32.xlu1 %v147_v4, %s634_s15  ;;  %264 = vrot.lane.b32.xlu0 %v146_v5, %s634_s15 }
  0x64   : > { %400 = vrot.lane.b32.xlu1 %v390_v20, %s634_s15  ;;  %350 = vrot.lane.b32.xlu0 %v340_v21, %s634_s15 }
  0x68   : > { %270 = vrot.lane.b32.xlu1 %v740_v6, %s634_s15  ;;  %268 = vrot.lane.b32.xlu0 %v743_v7, %s634_s15 }
  0x6c   : > { %402 = vrot.lane.b32.xlu1 %v391_v22, %s634_s15  ;;  %352 = vrot.lane.b32.xlu0 %v341_v23, %s634_s15 }
  0x70   : > { %307 = vrot.lane.b32.xlu1 %v143_v3, %s635_s21  ;;  %305 = vrot.lane.b32.xlu0 %v142_v1, %s635_s21 }
  0x74   : > { %420 = vrot.lane.b32.xlu1 %v412_v24, %s635_s21  ;;  %371 = vrot.lane.b32.xlu0 %v363_v25, %s635_s21 }
  0x78   : > { %311 = vrot.lane.b32.xlu1 %v145_v2, %s635_s21  ;;  %309 = vrot.lane.b32.xlu0 %v731_v0, %s635_s21 }
  0x7c   : > { %422 = vrot.lane.b32.xlu1 %v413_v26, %s635_s21  ;;  %373 = vrot.lane.b32.xlu0 %v364_v27, %s635_s21 }
  0x80   : > { %315 = vrot.lane.b32.xlu1 %v147_v4, %s635_s21  ;;  %313 = vrot.lane.b32.xlu0 %v146_v5, %s635_s21 }
  0x84   : > { %424 = vrot.lane.b32.xlu1 %v414_v28, %s635_s21  ;;  %375 = vrot.lane.b32.xlu0 %v365_v29, %s635_s21 }
  0x88   : > { %319 = vrot.lane.b32.xlu1 %v740_v6, %s635_s21  ;;  %317 = vrot.lane.b32.xlu0 %v743_v7, %s635_s21 }
  0x8c   : > { %426 = vrot.lane.b32.xlu1 %v415_v30, %s635_s21  ;;  %377 = vrot.lane.b32.xlu0 %v366_v31, %s635_s21 }
  0xa2   : > { %v163_v32 = vpop.permute.xlu1 %162  ;;  %v159_v33 = vpop.permute.xlu0 %158 }
  0xa3   : > { %183 = vst.msk [vmem:[%s782_s26 + $0x2] sm:$0xff] %vm182_vm0, %v159_v33  ;;  %185 = vst.msk [vmem:[%s782_s26 + $0x1a] sm:$0xff] %vm182_vm0, %v163_v32 }
  0xa6   : > { %v165_v34 = vpop.permute.xlu1 %164  ;;  %v161_v35 = vpop.permute.xlu0 %160 }
  0xa7   : > { %184 = vst.msk [vmem:[%s782_s26 + $0xa] sm:$0xff] %vm182_vm0, %v161_v35  ;;  %186 = vst.msk [vmem:[%s782_s26 + $0x22] sm:$0xff] %vm182_vm0, %v165_v34 }
  0xaa   : > { %v169_v36 = vpop.permute.xlu1 %168  ;;  %v167_v37 = vpop.permute.xlu0 %166 }
  0xab   : > { %188 = vst.msk [vmem:[%s782_s26 + $0x3a] sm:$0xff] %vm182_vm0, %v169_v36  ;;  %187 = vst.msk [vmem:[%s782_s26 + $0x32] sm:$0xff] %vm182_vm0, %v167_v37 }
  0xae   : > { %v173_v38 = vpop.permute.xlu1 %172  ;;  %v171_v39 = vpop.permute.xlu0 %170 }
  0xaf   : > { %190 = vst.msk [vmem:[%s782_s26 + $0x52] sm:$0xff] %vm182_vm0, %v173_v38  ;;  %189 = vst.msk [vmem:[%s782_s26 + $0x4a] sm:$0xff] %vm182_vm0, %v171_v39 }
  0xb2   : > { %v202_v40 = vpop.permute.xlu1 %201  ;;  %v200_v41 = vpop.permute.xlu0 %199 }
  0xb3   : > { %212 = vst.msk [vmem:[%s782_s26] sm:$0x3] %vm211_vm1, %v200_v41  ;;  %213 = vst.msk [vmem:[%s782_s26 + $0x18] sm:$0x3] %vm211_vm1, %v202_v40 }
  0xb6   : > { %v206_v42 = vpop.permute.xlu1 %205  ;;  %v204_v43 = vpop.permute.xlu0 %203 }
  0xb7   : > { %214 = vst.msk [vmem:[%s782_s26 + $0x30] sm:$0x3] %vm211_vm1, %v204_v43  ;;  %215 = vst.msk [vmem:[%s782_s26 + $0x48] sm:$0x3] %vm211_vm1, %v206_v42 }
  0xba   : > { %v227_v44 = vpop.permute.xlu1 %226  ;;  %v225_v45 = vpop.permute.xlu0 %224 }
  0xbb   : > { %236 = vst.msk [vmem:[%s782_s26 + $0x12] sm:$0x3] %vm211_vm1, %v225_v45  ;;  %237 = vst.msk [vmem:[%s782_s26 + $0x2a] sm:$0x3] %vm211_vm1, %v227_v44 }
  0xbe   : > { %v231_v46 = vpop.permute.xlu1 %230  ;;  %v229_v47 = vpop.permute.xlu0 %228 }
  0xbf   : > { %238 = vst.msk [vmem:[%s782_s26 + $0x42] sm:$0x3] %vm211_vm1, %v229_v47  ;;  %239 = vst.msk [vmem:[%s782_s26 + $0x5a] sm:$0x3] %vm211_vm1, %v231_v46 }
  0xc2   : > { %v259_v48 = vpop.permute.xlu1 %258  ;;  %v257_v49 = vpop.permute.xlu0 %256 }
  0xc3   : > { %282 = vst.msk [vmem:[%s782_s26 + $0xa] sm:$0xff] %vm280_vm2, %v259_v48  ;;  %281 = vst.msk [vmem:[%s782_s26 + $0x2] sm:$0xff] %vm280_vm2, %v257_v49 }
  0xc6   : > { %v397_v50 = vpop.permute.xlu1 %396  ;;  %v347_v51 = vpop.permute.xlu0 %346 }
  0xc7   : > { %408 = vst.msk [vmem:[%s782_s26 + $0x12] sm:$0x3] %vm358_vm3, %v397_v50  ;;  %359 = vst.msk [vmem:[%s782_s26] sm:$0x3] %vm358_vm3, %v347_v51 }
  0xca   : > { %v263_v52 = vpop.permute.xlu1 %262  ;;  %v261_v53 = vpop.permute.xlu0 %260 }
  0xcb   : > { %284 = vst.msk [vmem:[%s782_s26 + $0x22] sm:$0xff] %vm280_vm2, %v263_v52  ;;  %283 = vst.msk [vmem:[%s782_s26 + $0x1a] sm:$0xff] %vm280_vm2, %v261_v53 }
  0xce   : > { %v399_v54 = vpop.permute.xlu1 %398  ;;  %v349_v55 = vpop.permute.xlu0 %348 }
  0xcf   : > { %409 = vst.msk [vmem:[%s782_s26 + $0x2a] sm:$0x3] %vm358_vm3, %v399_v54  ;;  %360 = vst.msk [vmem:[%s782_s26 + $0x18] sm:$0x3] %vm358_vm3, %v349_v55 }
  0xd2   : > { %v267_v56 = vpop.permute.xlu1 %266  ;;  %v265_v57 = vpop.permute.xlu0 %264 }
  0xd3   : > { %286 = vst.msk [vmem:[%s782_s26 + $0x3a] sm:$0xff] %vm280_vm2, %v267_v56  ;;  %285 = vst.msk [vmem:[%s782_s26 + $0x32] sm:$0xff] %vm280_vm2, %v265_v57 }
  0xd6   : > { %v401_v58 = vpop.permute.xlu1 %400  ;;  %v351_v59 = vpop.permute.xlu0 %350 }
  0xd7   : > { %410 = vst.msk [vmem:[%s782_s26 + $0x42] sm:$0x3] %vm358_vm3, %v401_v58  ;;  %361 = vst.msk [vmem:[%s782_s26 + $0x30] sm:$0x3] %vm358_vm3, %v351_v59 }
  0xda   : > { %v271_v60 = vpop.permute.xlu1 %270  ;;  %v269_v61 = vpop.permute.xlu0 %268 }
  0xdb   : > { %288 = vst.msk [vmem:[%s782_s26 + $0x52] sm:$0xff] %vm280_vm2, %v271_v60  ;;  %287 = vst.msk [vmem:[%s782_s26 + $0x4a] sm:$0xff] %vm280_vm2, %v269_v61 }
  0xde   : > { %v403_v62 = vpop.permute.xlu1 %402  ;;  %v353_v63 = vpop.permute.xlu0 %352 }
  0xdf   : > { %411 = vst.msk [vmem:[%s782_s26 + $0x5a] sm:$0x3] %vm358_vm3, %v403_v62  ;;  %362 = vst.msk [vmem:[%s782_s26 + $0x48] sm:$0x3] %vm358_vm3, %v353_v63 }
  0xe2   : > { %v308_v0 = vpop.permute.xlu1 %307  ;;  %v306_v1 = vpop.permute.xlu0 %305 }
  0xe3   : > { %331 = vst.msk [vmem:[%s782_s26 + $0xa] sm:$0xff] %vm329_vm4, %v308_v0  ;;  %330 = vst.msk [vmem:[%s782_s26 + $0x2] sm:$0xff] %vm329_vm4, %v306_v1 }
  0xe6   : > { %v421_v2 = vpop.permute.xlu1 %420  ;;  %v372_v3 = vpop.permute.xlu0 %371 }
  0xe7   : > { %432 = vst.msk [vmem:[%s782_s26 + $0x12] sm:$0x3] %vm383_vm5, %v421_v2  ;;  %384 = vst.msk [vmem:[%s782_s26] sm:$0x3] %vm383_vm5, %v372_v3 }
  0xea   : > { %v312_v4 = vpop.permute.xlu1 %311  ;;  %v310_v5 = vpop.permute.xlu0 %309 }
  0xeb   : > { %333 = vst.msk [vmem:[%s782_s26 + $0x22] sm:$0xff] %vm329_vm4, %v312_v4  ;;  %332 = vst.msk [vmem:[%s782_s26 + $0x1a] sm:$0xff] %vm329_vm4, %v310_v5 }
  0xee   : > { %v423_v6 = vpop.permute.xlu1 %422  ;;  %v374_v7 = vpop.permute.xlu0 %373 }
  0xef   : > { %433 = vst.msk [vmem:[%s782_s26 + $0x2a] sm:$0x3] %vm383_vm5, %v423_v6  ;;  %385 = vst.msk [vmem:[%s782_s26 + $0x18] sm:$0x3] %vm383_vm5, %v374_v7 }
  0xf2   : > { %v316_v8 = vpop.permute.xlu1 %315  ;;  %v314_v9 = vpop.permute.xlu0 %313 }
  0xf3   : > { %335 = vst.msk [vmem:[%s782_s26 + $0x3a] sm:$0xff] %vm329_vm4, %v316_v8  ;;  %334 = vst.msk [vmem:[%s782_s26 + $0x32] sm:$0xff] %vm329_vm4, %v314_v9 }
  0xf6   : > { %v425_v10 = vpop.permute.xlu1 %424  ;;  %v376_v11 = vpop.permute.xlu0 %375 }
  0xf7   : > { %434 = vst.msk [vmem:[%s782_s26 + $0x42] sm:$0x3] %vm383_vm5, %v425_v10  ;;  %386 = vst.msk [vmem:[%s782_s26 + $0x30] sm:$0x3] %vm383_vm5, %v376_v11 }
  0xfa   : > { %v320_v12 = vpop.permute.xlu1 %319  ;;  %v318_v13 = vpop.permute.xlu0 %317 }
  0xfb   : > { %337 = vst.msk [vmem:[%s782_s26 + $0x52] sm:$0xff] %vm329_vm4, %v320_v12  ;;  %336 = vst.msk [vmem:[%s782_s26 + $0x4a] sm:$0xff] %vm329_vm4, %v318_v13 }
  0xfe   : > { %v427_v14 = vpop.permute.xlu1 %426  ;;  %v378_v15 = vpop.permute.xlu0 %377 }
  0xff   : > { %435 = vst.msk [vmem:[%s782_s26 + $0x5a] sm:$0x3] %vm383_vm5, %v427_v14  ;;  %387 = vst.msk [vmem:[%s782_s26 + $0x48] sm:$0x3] %vm383_vm5, %v378_v15 }
 0x100 PF: > { %p11_p9 = scmp.ge.s32.totalorder %s666_s11, 4   ;;  %s900_s6 = smov %s620_s7 }
 0x101   : > { %s901_s7 = smov %s624_s8  ;;  %s902_s8 = smov %s676_s14 }
 0x102   : > { %s903_s9 = smov %s666_s11  ;;  %13 = sbr.rel (!%p11_p9) target bundleno = 3 (0x3), region = 64 }
 0x107   :  { %460 = vsyncpa [#allocation3], 1 }
 0x108   :  { %462 = vsyncpa [#allocation3 + $0x1], 1 }

</bundles_post_ra>
